<compile_context>
chip_gen: v6e
topology: v6e:2x2x1
jax: 0.10.0
libtpu: 0.0.40
codegen_flags: <defaults>
</compile_context>

<pallas_src>
import functools

import jax
import jax.numpy as jnp
from jax.experimental import pallas as pl
from jax.experimental.pallas import tpu as pltpu


# -----------------------------------------------------------------------------
# Generic M-tiled fused linear:  y = sum_k x_k @ w_k + b   (split-K / fused terms).
# Matmul operands are bf16 (MXU native rate); accumulation / bias / output are f32.
# -----------------------------------------------------------------------------
def _fused_linear_kernel(*refs, n_terms):
    xs = refs[:n_terms]
    ws = refs[n_terms:2 * n_terms]
    b_ref = refs[2 * n_terms]
    o_ref = refs[2 * n_terms + 1]
    acc = jnp.dot(xs[0][...], ws[0][...], preferred_element_type=jnp.float32) + b_ref[...]
    for x_ref, w_ref in zip(xs[1:], ws[1:]):
        acc = acc + jnp.dot(x_ref[...], w_ref[...], preferred_element_type=jnp.float32)
    o_ref[...] = acc


def pallas_fused_linear(xs, ws, b, *, tile_m=512):
    """xs: list of (M, K_i) bf16; ws: list of (K_i, N) bf16; b: (1, N) f32 -> (M, N) f32.

    tile_m=512 keeps double-buffered tiles inside v7x's scoped VMEM; bump to 1024 on
    v5e/v6e for a bit more of the HBM roofline."""
    n = len(xs)
    M = xs[0].shape[0]
    N = ws[0].shape[1]
    tm = min(tile_m, M)
    grid = (pl.cdiv(M, tm),)
    in_specs = (
        [pl.BlockSpec((tm, x.shape[1]), lambda i: (i, 0)) for x in xs]
        + [pl.BlockSpec(w.shape, lambda i: (0, 0)) for w in ws]
        + [pl.BlockSpec(b.shape, lambda i: (0, 0))]
    )
    return pl.pallas_call(
        functools.partial(_fused_linear_kernel, n_terms=n),
        out_shape=jax.ShapeDtypeStruct((M, N), jnp.float32),
        grid=grid,
        in_specs=in_specs,
        out_specs=pl.BlockSpec((tm, N), lambda i: (i, 0)),
        compiler_params=pltpu.CompilerParams(
            dimension_semantics=("parallel",)),
    )(*xs, *ws, b)


# -----------------------------------------------------------------------------
# Fused bidirectional LSTM scan. The input projection (Gx, bias folded in) is
# precomputed; only the recurrent matmul + gate math run inside the time loop.
# Final hidden/cell projections (hidden_nn / cell_nn) are fused into the epilogue.
# -----------------------------------------------------------------------------
def _bilstm_kernel(gx_ref, whh_ref, whidf_ref, whidr_ref, wcellf_ref, wcellr_ref,
                   bhid_ref, bcell_ref,
                   fout_ref, rout_ref, hid_ref, cell_ref,
                   h_scr, c_scr, *, seq_len, batch, hidden):
    T, B, H = seq_len, batch, hidden

    # TODO(synk): reference inits h0 via xavier_normal_ on an expanded zero view
    #             (ill-defined); use h0 = c0 = 0 deterministically.
    h_scr[...] = jnp.zeros((2 * B, H), jnp.float32)
    c_scr[...] = jnp.zeros((2 * B, H), jnp.float32)

    @pl.loop(0, T)
    def _(t):
        # One MXU call covers both directions: (2B, H) @ (H, 4H). The x-projection
        # (with both biases folded in) is precomputed in gx_ref, so the serial chain
        # per timestep is just this small matmul plus EUP/VPU gate math.
        gh = jnp.dot(h_scr[...].astype(jnp.bfloat16), whh_ref[...],
                     preferred_element_type=jnp.float32)          # (2B, 4H) f32

        def lstm_gates(pre, c_prev):                              # torch order: i, f, g, o
            i = jax.nn.sigmoid(pre[:, 0 * H:1 * H])
            f = jax.nn.sigmoid(pre[:, 1 * H:2 * H])
            g = jnp.tanh(pre[:, 2 * H:3 * H])
            o = jax.nn.sigmoid(pre[:, 3 * H:4 * H])
            c_new = f * c_prev + i * g
            return c_new, o * jnp.tanh(c_new)
        # TODO(synk): for H >= 1024, split this gate math into 512-lane column chunks
        #             if bundle dumps show vreg spills.

        c_f, h_f = lstm_gates(gh[0:B] + gx_ref[t], c_scr[0:B])
        c_r, h_r = lstm_gates(gh[B:2 * B] + gx_ref[T - 1 - t], c_scr[B:2 * B])

        c_scr[0:B] = c_f
        c_scr[B:2 * B] = c_r
        h_scr[0:B] = h_f
        h_scr[B:2 * B] = h_r
        # Full (B, H) slab stores (B padded to a sublane multiple in the wrapper).
        fout_ref[t] = h_f.astype(fout_ref.dtype)
        rout_ref[T - 1 - t] = h_r.astype(rout_ref.dtype)

    # BiRecurrent.hidden_nn / cell_nn on cat(fwd, rev) final states, fused here to
    # avoid two extra tiny pallas_call launches.
    hb = h_scr[...].astype(jnp.bfloat16)
    cb = c_scr[...].astype(jnp.bfloat16)
    hid_ref[...] = (jnp.dot(hb[0:B], whidf_ref[...], preferred_element_type=jnp.float32)
                    + jnp.dot(hb[B:2 * B], whidr_ref[...], preferred_element_type=jnp.float32)
                    + bhid_ref[...])
    cell_ref[...] = (jnp.dot(cb[0:B], wcellf_ref[...], preferred_element_type=jnp.float32)
                     + jnp.dot(cb[B:2 * B], wcellr_ref[...], preferred_element_type=jnp.float32)
                     + bcell_ref[...])


def bilstm_scan(gx, w_hh, w_hid_f, w_hid_r, w_cell_f, w_cell_r, b_hid, b_cell,
                *, hidden_size):
    """gx: (T, Bp, 4H) f32 precomputed x-projection (+bias); weights bf16; biases f32.

    Returns (f_out (T,Bp,H) bf16, r_out (T,Bp,H) bf16 in forward time order,
             hidden (Bp,HID) f32, cell (Bp,HID) f32)."""
    T, Bp, _ = gx.shape
    H = hidden_size
    HID = w_hid_f.shape[1]
    kernel = functools.partial(_bilstm_kernel, seq_len=T, batch=Bp, hidden=H)
    vmem_spec = pl.BlockSpec(memory_space=pltpu.MemorySpace.VMEM)
    # Grid-less call with whole-array VMEM refs: single-buffered residency (a grid=(1,)
    # blocked spec would double-buffer every full-size array for no benefit).
    return pl.pallas_call(
        kernel,
        out_shape=(
            jax.ShapeDtypeStruct((T, Bp, H), jnp.bfloat16),   # forward h_t
            jax.ShapeDtypeStruct((T, Bp, H), jnp.bfloat16),   # reverse h_t (fwd time order)
            jax.ShapeDtypeStruct((Bp, HID), jnp.float32),     # hidden_nn(cat(h_f, h_r))
            jax.ShapeDtypeStruct((Bp, HID), jnp.float32),     # cell_nn(cat(c_f, c_r))
        ),
        in_specs=[vmem_spec] * 8,
        out_specs=(vmem_spec, vmem_spec, vmem_spec, vmem_spec),
        scratch_shapes=[pltpu.VMEM((2 * Bp, H), jnp.float32),   # h state (fwd rows 0:B)
                        pltpu.VMEM((2 * Bp, H), jnp.float32)],  # c state
        compiler_params=pltpu.CompilerParams(vmem_limit_bytes=48 * 1024 * 1024),
    )(gx, w_hh, w_hid_f, w_hid_r, w_cell_f, w_cell_r, b_hid, b_cell)


# -----------------------------------------------------------------------------
# Parameter construction (torch layout) + one-time Pallas-friendly re-layout.
# -----------------------------------------------------------------------------
def init_encoder_params(key, *, vocab, emb_dim, rnn_dim, pad_id,
                        out_transform, hid_transform):
    ks = jax.random.split(key, 12)
    H = rnn_dim
    bound_lstm = 1.0 / jnp.sqrt(H)

    emb = jax.random.normal(ks[0], (vocab, emb_dim), jnp.float32)
    emb = emb.at[pad_id].set(0.0)                      # padding_idx row zeroed

    def u(k, shape, bound):
        return jax.random.uniform(k, shape, jnp.float32, -bound, bound)

    return {
        "embedding": emb,
        # nn.LSTMCell(emb_dim, H) — shared by forward and reverse directions
        "w_ih": u(ks[1], (4 * H, emb_dim), bound_lstm),
        "w_hh": u(ks[2], (4 * H, H), bound_lstm),
        "b_ih": u(ks[3], (4 * H,), bound_lstm),
        "b_hh": u(ks[4], (4 * H,), bound_lstm),
        # BiRecurrent transformers: Linear(2H -> *)
        "w_out": u(ks[5], (out_transform, 2 * H), 1.0 / jnp.sqrt(2 * H)),
        "b_out": u(ks[6], (out_transform,), 1.0 / jnp.sqrt(2 * H)),
        "w_hid": u(ks[7], (hid_transform, 2 * H), 1.0 / jnp.sqrt(2 * H)),
        "b_hid": u(ks[8], (hid_transform,), 1.0 / jnp.sqrt(2 * H)),
        "w_cell": u(ks[9], (hid_transform, 2 * H), 1.0 / jnp.sqrt(2 * H)),
        "b_cell": u(ks[10], (hid_transform,), 1.0 / jnp.sqrt(2 * H)),
    }


def prepare_params(params, *, rnn_dim):
    """One-time re-layout: transpose + bf16-cast matmul weights, split Linears along K,
    pre-sum the residual-fused output weight, fold the two LSTM biases together."""
    H = rnn_dim
    bf16 = jnp.bfloat16
    w_ih = jnp.transpose(params["w_ih"]).astype(bf16)            # (E, 4H)
    w_hh = jnp.transpose(params["w_hh"]).astype(bf16)            # (H, 4H)
    b_lstm = (params["b_ih"] + params["b_hh"]).reshape(1, -1)    # (1, 4H) f32

    def split(w, b):
        wt = jnp.transpose(w)                                    # (2H, N) f32
        return (wt[:H].astype(bf16), wt[H:].astype(bf16),
                b.reshape(1, -1).astype(jnp.float32),
                (wt[:H] + wt[H:]).astype(bf16))                  # residual-fused weight

    w_out_f, w_out_r, b_out, w_out_res = split(params["w_out"], params["b_out"])
    w_hid_f, w_hid_r, b_hid, _ = split(params["w_hid"], params["b_hid"])
    w_cell_f, w_cell_r, b_cell, _ = split(params["w_cell"], params["b_cell"])
    return {
        "embedding": params["embedding"],
        "w_ih": w_ih, "w_hh": w_hh, "b_lstm": b_lstm,
        "w_out_f": w_out_f, "w_out_r": w_out_r, "w_out_res": w_out_res, "b_out": b_out,
        "w_hid_f": w_hid_f, "w_hid_r": w_hid_r, "b_hid": b_hid,
        "w_cell_f": w_cell_f, "w_cell_r": w_cell_r, "b_cell": b_cell,
    }


# -----------------------------------------------------------------------------
# Encoder forward: gather/relu/pad glue in JAX; projections + recurrence in Pallas.
# -----------------------------------------------------------------------------
def encoder_forward(prep, enc_input, *, rnn_dim, residual=True):
    H = rnn_dim
    # Time-major embedding gather: transpose the small (B,T) int index array, not the
    # (B,T,E) float tensor. Embedding/final dropouts have p=0 -> identity; F.relu is
    # applied per the reference Encoder.forward.
    x = jax.nn.relu(prep["embedding"][enc_input.T])              # (T, B, E) f32
    T, B, E = x.shape

    # Pad batch to a sublane multiple so all per-step state slices / stores are dense.
    Bp = ((B + 7) // 8) * 8
    if Bp != B:
        x = jnp.pad(x, ((0, 0), (0, Bp - B), (0, 0)))
    x_bf = x.astype(jnp.bfloat16)
    x2d = x_bf.reshape(T * Bp, E)

    # Hoisted input projection (bias folded in): one big batched matmul.
    gx = pallas_fused_linear([x2d], [prep["w_ih"]],
                             prep["b_lstm"]).reshape(T, Bp, 4 * H)

    fout, rout, hid, cell = bilstm_scan(
        gx, prep["w_hh"], prep["w_hid_f"], prep["w_hid_r"],
        prep["w_cell_f"], prep["w_cell_r"], prep["b_hid"], prep["b_cell"],
        hidden_size=H)

    f2d = fout.reshape(T * Bp, H)
    r2d = rout.reshape(T * Bp, H)
    # Output projection with direction-concat fused (split-K). The StackLSTMCell
    # residual (only when E == H, per the reference) is fused as a third term:
    #   (h_f + x) @ Wf + (h_r + x) @ Wr + b == h_f@Wf + h_r@Wr + x@(Wf+Wr) + b.
    if residual and E == H:
        out2d = pallas_fused_linear(
            [f2d, r2d, x2d],
            [prep["w_out_f"], prep["w_out_r"], prep["w_out_res"]], prep["b_out"])
    else:
        out2d = pallas_fused_linear(
            [f2d, r2d], [prep["w_out_f"], prep["w_out_r"]], prep["b_out"])

    OUT = out2d.shape[1]
    output = jnp.transpose(out2d.reshape(T, Bp, OUT), (1, 0, 2))[:B]   # (B, T, OUT)
    hidden = hid[:B][None]                                             # (1, B, HID)
    cell = cell[:B][None]                                              # (1, B, HID)
    return output, (hidden, cell)


if __name__ == "__main__":
    # Small config consistent with the module: n_layers=1, bidirectional=True,
    # all dropouts = 0, emb_dim == rnn_dim so the residual path is exercised.
    VOCAB, EMB_DIM, RNN_DIM, PAD_ID = 20, 32, 32, 0
    OUT_TR, HID_TR = 32, 32
    B, T = 2, 8

    key = jax.random.PRNGKey(0)
    pkey, ikey = jax.random.split(key)
    params = init_encoder_params(pkey, vocab=VOCAB, emb_dim=EMB_DIM,
                                 rnn_dim=RNN_DIM, pad_id=PAD_ID,
                                 out_transform=OUT_TR, hid_transform=HID_TR)
    prep = prepare_params(params, rnn_dim=RNN_DIM)

    enc_input = jax.random.randint(ikey, (B, T), 0, VOCAB, dtype=jnp.int32)
    enc_input = enc_input.at[0, T - 1].set(PAD_ID)     # include some padding tokens
    enc_input = enc_input.at[1, T - 2:].set(PAD_ID)

    output, (hidden, cell) = encoder_forward(prep, enc_input, rnn_dim=RNN_DIM)
    jax.block_until_ready((output, hidden, cell))

    assert output.shape == (B, T, OUT_TR)
    assert hidden.shape == (1, B, HID_TR)
    assert cell.shape == (1, B, HID_TR)
    print("KERNEL_OK")
</pallas_src>

<mosaic_0001>
module attributes {stable_mosaic.version = 11 : i64} {
  func.func @_fused_linear_kernel(%arg0: i32, %arg1: memref<64x32xbf16, #tpu.memory_space<vmem>>, %arg2: memref<32x128xbf16, #tpu.memory_space<vmem>>, %arg3: memref<1x128xf32, #tpu.memory_space<vmem>>, %arg4: memref<64x128xf32, #tpu.memory_space<vmem>>) attributes {dimension_semantics = [#tpu.dimension_semantics<parallel>], iteration_bounds = array<i64: 1>, scalar_prefetch = 0 : i64, scratch_operands = 0 : i64, tpu.core_type = #tpu.core_type<tc>, window_params = [{transform_indices = @transform_0, window_bounds = array<i64: 64, 32>}, {pipeline_mode = #tpu.pipeline_mode<synchronous>, transform_indices = @transform_1, window_bounds = array<i64: 32, 128>}, {pipeline_mode = #tpu.pipeline_mode<synchronous>, transform_indices = @transform_2, window_bounds = array<i64: 1, 128>}, {transform_indices = @transform_3, window_bounds = array<i64: 64, 128>}]} {
    %c0 = arith.constant 0 : index
    %c0_0 = arith.constant 0 : index
    %0 = vector.load %arg1[%c0, %c0_0] : memref<64x32xbf16, #tpu.memory_space<vmem>>, vector<64x32xbf16>
    %c0_1 = arith.constant 0 : index
    %c0_2 = arith.constant 0 : index
    %1 = vector.load %arg2[%c0_1, %c0_2] : memref<32x128xbf16, #tpu.memory_space<vmem>>, vector<32x128xbf16>
    %cst = arith.constant dense<0.000000e+00> : vector<64x128xf32>
    %2 = tpu.matmul %0, %1, %cst {dimension_numbers = #tpu.dot_dimension_numbers<[1], [0], [0], [1], [0, 0, 1, 1], [], []>} : vector<64x32xbf16>, vector<32x128xbf16>, vector<64x128xf32> -> vector<64x128xf32>
    %c0_3 = arith.constant 0 : index
    %c0_4 = arith.constant 0 : index
    %3 = vector.load %arg3[%c0_3, %c0_4] : memref<1x128xf32, #tpu.memory_space<vmem>>, vector<1x128xf32>
    %4 = vector.broadcast %3 : vector<1x128xf32> to vector<64x128xf32>
    %5 = arith.addf %2, %4 : vector<64x128xf32>
    %c0_5 = arith.constant 0 : index
    %c0_6 = arith.constant 0 : index
    %6 = vector.load %arg4[%c0_5, %c0_6] : memref<64x128xf32, #tpu.memory_space<vmem>>, vector<64x128xf32>
    tpu.vector_store %arg4[%c0_5, %c0_6], %5 {strides = array<i32>} : memref<64x128xf32, #tpu.memory_space<vmem>>, vector<64x128xf32>,
    return
  }
  func.func @transform_0(%arg0: i32) -> (i32, i32) {
    %c0_i32 = arith.constant 0 : i32
    %c0_i32_0 = arith.constant 0 : i32
    return %arg0, %c0_i32 : i32, i32
  }
  func.func @transform_1(%arg0: i32) -> (i32, i32) {
    %c0_i32 = arith.constant 0 : i32
    %c0_i32_0 = arith.constant 0 : i32
    %c0_i32_1 = arith.constant 0 : i32
    return %c0_i32, %c0_i32_0 : i32, i32
  }
  func.func @transform_2(%arg0: i32) -> (i32, i32) {
    %c0_i32 = arith.constant 0 : i32
    %c0_i32_0 = arith.constant 0 : i32
    %c0_i32_1 = arith.constant 0 : i32
    return %c0_i32, %c0_i32_0 : i32, i32
  }
  func.func @transform_3(%arg0: i32) -> (i32, i32) {
    %c0_i32 = arith.constant 0 : i32
    %c0_i32_0 = arith.constant 0 : i32
    return %arg0, %c0_i32 : i32, i32
  }
}

</mosaic_0001>

<bundles_post_ra>
// kernel: tpu_custom_call.1
= control target key start
LH: loop header
LB: loop body
LE: loop exit
PB: predicated region body
PF: predicated region fallthrough
CT: control target
= control target key end

     0   :  { %vm67_vm0 = vcmask 261120   ;;  %s280_s0 = inlined_call_operand.vmem [shape: bf16[64,32], index: 0, kind: input, shape index: {}]   ;;  %s281_s1 = inlined_call_operand.vmem [shape: bf16[32,128], index: 1, kind: input, shape index: {}]   ;;  %s282_s2 = inlined_call_operand.vmem [shape: f32[1,128], index: 2, kind: input, shape index: {}]   ;;  %s283_s3 = inlined_call_operand.hbm [shape: f32[64,128], index: 3, kind: output, shape index: {}]  }
   0x1   :  { %v205_v0 = vld [vmem:[%s281_s1 + $0x8] sm:$0xff]   ;;  %v206_v1 = vld [vmem:[%s281_s1] sm:$0xff]   ;;  %v208_v3 = vld [vmem:[%s280_s0 + $0x10] sm:$0xff]  }
   0x2   :  { %186 = vmatprep.subr.bf16.mxu0 %v205_v0  ;;  %198 = vmatprep.subr.bf16.mxu1 %v205_v0  ;;  %v207_v2 = vld [vmem:[%s280_s0] sm:$0xff]   ;;  %v209_v4 = vld [vmem:[%s280_s0 + $0x8] sm:$0xff]   ;;  %v210_v5 = vld [vmem:[%s280_s0 + $0x18] sm:$0xff]  }
   0x3   :  { %187 = vmatpush3.bf16.msra.mxu0 %v205_v0  ;;  %200 = vmatpush3.bf16.msra.mxu1 %v205_v0 }
   0x4   :  { %188 = vmatprep.subr.bf16.mxu0 %v206_v1  ;;  %199 = vmatprep.subr.bf16.mxu1 %v206_v1 }
   0x5   :  { %190 = vmatprep.mubr.msk.bf16.mxu0 %vm67_vm0, %v207_v2  ;;  %194 = vmatprep.mubr.msk.bf16.mxu1 %vm67_vm0, %v208_v3 }
   0x6   :  { %8 = vsyncpa [#allocation3], 0  ;;  %v169_v6 = vld [vmem:[%s282_s2] ss:$0 sm:$0xff]  ;;  %s233_s0 = smov [#allocation2]  }
   0x7   :  { %189 = vmatpush3.bf16.msra.mxu0 %v206_v1  ;;  %201 = vmatpush3.bf16.msra.mxu1 %v206_v1  ;;  %s158_s25 = sshll.u32 %s233_s0, 4  ;;  %s159_s25 = int_to_ptr.vmem [resolvable:$true] %s158_s25 }
   0x8   :  { %s211_s2 = scalar_lea.vmem %s159_s25, 1024  ;;  %p216_p1 = scmp.lt.s32.totalorder %s159_s25, %s159_s25 }
   0x9   :  { %p212_p0 = scmp.ne.s32.totalorder %s159_s25, %s211_s2  ;;  %p217_p2 = scmp.lt.s32.totalorder %s211_s2, %s211_s2 }
   0xa   :  { %191 = vmatmul.mubr.msk.bf16.vlgmr.msra.gmra.mxu0 %vm67_vm0, %v209_v4  ;;  %195 = vmatmul.mubr.msk.bf16.vlgmr.msra.gmra.mxu1 %vm67_vm0, %v210_v5 }
   0xb   :  { %p218_p3 = por %p217_p2, %p216_p1 }
   0xd   :  { %p219_p4 = pnand %p218_p3, %p212_p0 }
  0xca   :  { %v192_v7 = vpop.f32.mrf.mxu0  ;;  %v196_v8 = vpop.f32.mrf.mxu1 }
  0xcb   :  { %v123_v9 = vadd.f32 %v192_v7, %v169_v6  ;;  %v139_v10 = vadd.f32 %v196_v8, %v169_v6 }
  0xcc   :  { %v114_v11 = vpop.f32.mrf.mxu0  ;;  %v130_v12 = vpop.f32.mrf.mxu1 }
  0xcd   :  { %147 = vst [vmem:[#allocation2 + $0x10] sm:$0xff] %v123_v9  ;;  %151 = vst [vmem:[#allocation2 + $0x30] sm:$0xff] %v139_v10  ;;  %v115_v13 = vadd.f32 %v169_v6, %v114_v11  ;;  %v131_v14 = vadd.f32 %v169_v6, %v130_v12 }
  0xce   :  { %v193_v15 = vpop.f32.mrf.mxu0  ;;  %v197_v16 = vpop.f32.mrf.mxu1 }
  0xcf   :  { %145 = vst [vmem:[#allocation2] sm:$0xff] %v115_v13  ;;  %149 = vst [vmem:[#allocation2 + $0x20] sm:$0xff] %v131_v14  ;;  %v126_v17 = vadd.f32 %v193_v15, %v169_v6  ;;  %v142_v18 = vadd.f32 %v197_v16, %v169_v6 }
  0xd0   :  { %v117_v19 = vpop.f32.mrf.mxu0  ;;  %v133_v20 = vpop.f32.mrf.mxu1 }
  0xd1   :  { %148 = vst [vmem:[#allocation2 + $0x18] sm:$0xff] %v126_v17  ;;  %152 = vst [vmem:[#allocation2 + $0x38] sm:$0xff] %v142_v18  ;;  %v118_v21 = vadd.f32 %v169_v6, %v117_v19  ;;  %v134_v22 = vadd.f32 %v169_v6, %v133_v20 }
  0xd3   :  { %146 = vst [vmem:[#allocation2 + $0x8] sm:$0xff] %v118_v21  ;;  %150 = vst [vmem:[#allocation2 + $0x28] sm:$0xff] %v134_v22 }
  0xd4   :  { %222 = shalt.err (!%p219_p4)
}
  0xd5   :  { %s234_s26 = smov 128   ;;  %s235_s27 = smov 8  }
  0xd6   :  { %164 = dma.vmem_to_hbm [thread:$0]  %s159_s25, 1024, %s283_s3, [#allocation3], %s234_s26, %s234_s26, %s235_s27  }
  0xd7   :  { %231 = dma.done.wait [#allocation3], 1024  }
  0xd8   :  { %232 = vsyncadd [#allocation3], 4294966272 }
  0xd9   :  { %168 = vsyncpa [#allocation3], 1 }

</bundles_post_ra>
